<compile_context>
chip_gen: v7x
topology: tpu7x:2x2x1
jax: 0.10.0
libtpu: 0.0.40
codegen_flags: <defaults>
</compile_context>

<pallas_src>
import jax
import jax.numpy as jnp
from jax.experimental import pallas as pl
from jax.experimental.pallas import tpu as pltpu

IN_SIZE = 16
HIDDEN = [32, 32]
OUT_SIZE = 8


def _softplus(x):
    # PyTorch Softplus: x if beta*x > threshold else (1/beta)*log(1+exp(beta*x)),
    # default beta=1, threshold=20. Clamp the exp argument so the unused branch
    # does not overflow.
    safe = jnp.minimum(x, 20.0)
    return jnp.where(x > 20.0, x, jnp.log1p(jnp.exp(safe)))


def mlp_kernel(xT_ref, w1_ref, b1_ref, w2_ref, b2_ref, w3_ref, b3_ref, oT_ref):
    # All operands are in "batch-on-lanes" layout:
    #   xT:  (IN, tm)      w_i: torch layout (out_i, in_i)     b_i: (out_i, 1)
    # Layer 1: Linear + Softplus
    h = jnp.dot(w1_ref[...], xT_ref[...], preferred_element_type=jnp.float32)
    h = _softplus(h + b1_ref[...])
    # Layer 2: Linear + Softplus
    h = jnp.dot(w2_ref[...], h, preferred_element_type=jnp.float32)
    h = _softplus(h + b2_ref[...])
    # Layer 3 (output): Linear, no activation (last_act=False)
    h = jnp.dot(w3_ref[...], h, preferred_element_type=jnp.float32)
    oT_ref[...] = (h + b3_ref[...]).astype(oT_ref.dtype)


def mlp_forward(x, params, *, tm=8192):
    """x: (N, IN_SIZE) float32.
    params: weights in torch layout (out, in), biases pre-reshaped to (out, 1)."""
    N, in_size = x.shape
    assert in_size == IN_SIZE

    # --- tile / grid selection (robust to arbitrary N) ---------------------
    tm = pl.cdiv(tm, 128) * 128                      # lane-dense tile
    tm_eff = min(tm, pl.cdiv(N, 128) * 128)          # don't over-tile small N
    n_pad = pl.cdiv(N, tm_eff) * tm_eff              # pad batch to whole tiles
    grid = (n_pad // tm_eff,)

    # --- layout plumbing (outside the kernel): batch on lanes --------------
    xT = x.T                                         # (IN, N)
    if n_pad != N:
        xT = jnp.pad(xT, ((0, 0), (0, n_pad - N)))   # zero-pad ragged tail

    w1, b1 = params["w1"], params["b1"]
    w2, b2 = params["w2"], params["b2"]
    w3, b3 = params["w3"], params["b3"]

    def full(arr):
        return pl.BlockSpec(arr.shape, lambda i: (0, 0))

    # VMEM budget: double-buffered x/out tiles + hidden activations + weights.
    vmem_budget = (2 * IN_SIZE + 2 * OUT_SIZE + 4 * max(HIDDEN)) * tm_eff * 4 + (4 << 20)
    vmem_budget = min(max(vmem_budget, 16 << 20), 56 << 20)

    oT = pl.pallas_call(
        mlp_kernel,
        out_shape=jax.ShapeDtypeStruct((OUT_SIZE, n_pad), x.dtype),
        grid_spec=pltpu.PrefetchScalarGridSpec(
            num_scalar_prefetch=0,
            grid=grid,
            in_specs=[
                pl.BlockSpec((IN_SIZE, tm_eff), lambda i: (0, i)),  # x tile (lane-dense)
                full(w1), full(b1),
                full(w2), full(b2),
                full(w3), full(b3),
            ],
            # Output block last dim = tm_eff (multiple of 128) -> unmasked vst.
            out_specs=pl.BlockSpec((OUT_SIZE, tm_eff), lambda i: (0, i)),
        ),
        compiler_params=pltpu.CompilerParams(
            dimension_semantics=("parallel",),
            vmem_limit_bytes=int(vmem_budget),
        ),
    )(xT, w1, b1, w2, b2, w3, b3)

    return oT.T[:N]                                  # back to (N, OUT_SIZE)


def init_params(key):
    """Deterministic init mimicking nn.Linear default (uniform in [-1/sqrt(in), 1/sqrt(in)]).
    Weights kept in torch layout (out, in); biases pre-reshaped to (out, 1)."""
    sizes = [IN_SIZE] + HIDDEN + [OUT_SIZE]
    params = {}
    keys = jax.random.split(key, 2 * (len(sizes) - 1))
    for li in range(len(sizes) - 1):
        fan_in, fan_out = sizes[li], sizes[li + 1]
        bound = 1.0 / jnp.sqrt(fan_in)
        params[f"w{li+1}"] = jax.random.uniform(
            keys[2 * li], (fan_out, fan_in), jnp.float32, -bound, bound
        )
        params[f"b{li+1}"] = jax.random.uniform(
            keys[2 * li + 1], (fan_out, 1), jnp.float32, -bound, bound
        )
    return params


def mlp_ref(x, params):
    """Pure-JAX reference of the PyTorch forward pass."""
    h = x @ params["w1"].T + params["b1"].reshape(1, -1)
    h = _softplus(h)
    h = h @ params["w2"].T + params["b2"].reshape(1, -1)
    h = _softplus(h)
    return h @ params["w3"].T + params["b3"].reshape(1, -1)


if __name__ == "__main__":
    key = jax.random.PRNGKey(0)
    kp, kx, kx2 = jax.random.split(key, 3)
    params = init_params(kp)

    # Small shape consistent with the module config: batch=16, in=16.
    x = jax.random.normal(kx, (16, IN_SIZE), jnp.float32)
    out = jax.block_until_ready(mlp_forward(x, params))
    ref = mlp_ref(x, params)
    assert out.shape == (16, OUT_SIZE)
    assert jnp.allclose(out, ref, atol=1e-5, rtol=1e-5), "mismatch vs reference (N=16)"

    # Second check: non-multiple batch with a multi-step grid (exercises
    # padding tail + pipelined tiles).
    x2 = jax.random.normal(kx2, (300, IN_SIZE), jnp.float32)
    out2 = jax.block_until_ready(mlp_forward(x2, params, tm=256))
    ref2 = mlp_ref(x2, params)
    assert out2.shape == (300, OUT_SIZE)
    assert jnp.allclose(out2, ref2, atol=1e-5, rtol=1e-5), "mismatch vs reference (N=300)"

    print("KERNEL_OK")
</pallas_src>

<mosaic_0001>
module attributes {stable_mosaic.version = 11 : i64} {
  func.func @mlp_kernel(%arg0: i32, %arg1: memref<16x128xf32, #tpu.memory_space<vmem>>, %arg2: memref<32x16xf32, #tpu.memory_space<vmem>>, %arg3: memref<32x1xf32, #tpu.memory_space<vmem>>, %arg4: memref<32x32xf32, #tpu.memory_space<vmem>>, %arg5: memref<32x1xf32, #tpu.memory_space<vmem>>, %arg6: memref<8x32xf32, #tpu.memory_space<vmem>>, %arg7: memref<8x1xf32, #tpu.memory_space<vmem>>, %arg8: memref<8x128xf32, #tpu.memory_space<vmem>>) attributes {dimension_semantics = [#tpu.dimension_semantics<parallel>], iteration_bounds = array<i64: 1>, scalar_prefetch = 0 : i64, scratch_operands = 0 : i64, tpu.core_type = #tpu.core_type<tc>, window_params = [{transform_indices = @transform_0, window_bounds = array<i64: 16, 128>}, {pipeline_mode = #tpu.pipeline_mode<synchronous>, transform_indices = @transform_1, window_bounds = array<i64: 32, 16>}, {pipeline_mode = #tpu.pipeline_mode<synchronous>, transform_indices = @transform_2, window_bounds = array<i64: 32, 1>}, {pipeline_mode = #tpu.pipeline_mode<synchronous>, transform_indices = @transform_3, window_bounds = array<i64: 32, 32>}, {pipeline_mode = #tpu.pipeline_mode<synchronous>, transform_indices = @transform_4, window_bounds = array<i64: 32, 1>}, {pipeline_mode = #tpu.pipeline_mode<synchronous>, transform_indices = @transform_5, window_bounds = array<i64: 8, 32>}, {pipeline_mode = #tpu.pipeline_mode<synchronous>, transform_indices = @transform_6, window_bounds = array<i64: 8, 1>}, {transform_indices = @transform_7, window_bounds = array<i64: 8, 128>}]} {
    %c0 = arith.constant 0 : index
    %c0_0 = arith.constant 0 : index
    %0 = vector.load %arg2[%c0, %c0_0] : memref<32x16xf32, #tpu.memory_space<vmem>>, vector<32x16xf32>
    %c0_1 = arith.constant 0 : index
    %c0_2 = arith.constant 0 : index
    %1 = vector.load %arg1[%c0_1, %c0_2] : memref<16x128xf32, #tpu.memory_space<vmem>>, vector<16x128xf32>
    %cst = arith.constant dense<0.000000e+00> : vector<32x128xf32>
    %2 = tpu.matmul %0, %1, %cst {dimension_numbers = #tpu.dot_dimension_numbers<[1], [0], [0], [1], [0, 0, 1, 1], [], []>} : vector<32x16xf32>, vector<16x128xf32>, vector<32x128xf32> -> vector<32x128xf32>
    %c0_3 = arith.constant 0 : index
    %c0_4 = arith.constant 0 : index
    %3 = vector.load %arg3[%c0_3, %c0_4] : memref<32x1xf32, #tpu.memory_space<vmem>>, vector<32x1xf32>
    %4 = vector.broadcast %3 : vector<32x1xf32> to vector<32x128xf32>
    %5 = arith.addf %2, %4 : vector<32x128xf32>
    %cst_5 = arith.constant 2.000000e+01 : f32
    %6 = vector.broadcast %cst_5 : f32 to vector<32x128xf32>
    %7 = arith.minimumf %5, %6 : vector<32x128xf32>
    %cst_6 = arith.constant 2.000000e+01 : f32
    %8 = vector.broadcast %cst_6 : f32 to vector<32x128xf32>
    %9 = arith.cmpf ogt, %5, %8 : vector<32x128xf32>
    %10 = math.exp %7 : vector<32x128xf32>
    %11 = math.log1p %10 : vector<32x128xf32>
    %12 = arith.select %9, %5, %11 : vector<32x128xi1>, vector<32x128xf32>
    %c0_7 = arith.constant 0 : index
    %c0_8 = arith.constant 0 : index
    %13 = vector.load %arg4[%c0_7, %c0_8] : memref<32x32xf32, #tpu.memory_space<vmem>>, vector<32x32xf32>
    %cst_9 = arith.constant dense<0.000000e+00> : vector<32x128xf32>
    %14 = tpu.matmul %13, %12, %cst_9 {dimension_numbers = #tpu.dot_dimension_numbers<[1], [0], [0], [1], [0, 0, 1, 1], [], []>} : vector<32x32xf32>, vector<32x128xf32>, vector<32x128xf32> -> vector<32x128xf32>
    %c0_10 = arith.constant 0 : index
    %c0_11 = arith.constant 0 : index
    %15 = vector.load %arg5[%c0_10, %c0_11] : memref<32x1xf32, #tpu.memory_space<vmem>>, vector<32x1xf32>
    %16 = vector.broadcast %15 : vector<32x1xf32> to vector<32x128xf32>
    %17 = arith.addf %14, %16 : vector<32x128xf32>
    %cst_12 = arith.constant 2.000000e+01 : f32
    %18 = vector.broadcast %cst_12 : f32 to vector<32x128xf32>
    %19 = arith.minimumf %17, %18 : vector<32x128xf32>
    %cst_13 = arith.constant 2.000000e+01 : f32
    %20 = vector.broadcast %cst_13 : f32 to vector<32x128xf32>
    %21 = arith.cmpf ogt, %17, %20 : vector<32x128xf32>
    %22 = math.exp %19 : vector<32x128xf32>
    %23 = math.log1p %22 : vector<32x128xf32>
    %24 = arith.select %21, %17, %23 : vector<32x128xi1>, vector<32x128xf32>
    %c0_14 = arith.constant 0 : index
    %c0_15 = arith.constant 0 : index
    %25 = vector.load %arg6[%c0_14, %c0_15] : memref<8x32xf32, #tpu.memory_space<vmem>>, vector<8x32xf32>
    %cst_16 = arith.constant dense<0.000000e+00> : vector<8x128xf32>
    %26 = tpu.matmul %25, %24, %cst_16 {dimension_numbers = #tpu.dot_dimension_numbers<[1], [0], [0], [1], [0, 0, 1, 1], [], []>} : vector<8x32xf32>, vector<32x128xf32>, vector<8x128xf32> -> vector<8x128xf32>
    %c0_17 = arith.constant 0 : index
    %c0_18 = arith.constant 0 : index
    %27 = vector.load %arg7[%c0_17, %c0_18] : memref<8x1xf32, #tpu.memory_space<vmem>>, vector<8x1xf32>
    %28 = vector.broadcast %27 : vector<8x1xf32> to vector<8x128xf32>
    %29 = arith.addf %26, %28 : vector<8x128xf32>
    %c0_19 = arith.constant 0 : index
    %c0_20 = arith.constant 0 : index
    %30 = vector.load %arg8[%c0_19, %c0_20] : memref<8x128xf32, #tpu.memory_space<vmem>>, vector<8x128xf32>
    tpu.vector_store %arg8[%c0_19, %c0_20], %29 {strides = array<i32>} : memref<8x128xf32, #tpu.memory_space<vmem>>, vector<8x128xf32>,
    return
  }
  func.func @transform_0(%arg0: i32) -> (i32, i32) {
    %c0_i32 = arith.constant 0 : i32
    %c0_i32_0 = arith.constant 0 : i32
    return %c0_i32, %arg0 : i32, i32
  }
  func.func @transform_1(%arg0: i32) -> (i32, i32) {
    %c0_i32 = arith.constant 0 : i32
    %c0_i32_0 = arith.constant 0 : i32
    %c0_i32_1 = arith.constant 0 : i32
    return %c0_i32, %c0_i32_0 : i32, i32
  }
  func.func @transform_2(%arg0: i32) -> (i32, i32) {
    %c0_i32 = arith.constant 0 : i32
    %c0_i32_0 = arith.constant 0 : i32
    %c0_i32_1 = arith.constant 0 : i32
    return %c0_i32, %c0_i32_0 : i32, i32
  }
  func.func @transform_3(%arg0: i32) -> (i32, i32) {
    %c0_i32 = arith.constant 0 : i32
    %c0_i32_0 = arith.constant 0 : i32
    %c0_i32_1 = arith.constant 0 : i32
    return %c0_i32, %c0_i32_0 : i32, i32
  }
  func.func @transform_4(%arg0: i32) -> (i32, i32) {
    %c0_i32 = arith.constant 0 : i32
    %c0_i32_0 = arith.constant 0 : i32
    %c0_i32_1 = arith.constant 0 : i32
    return %c0_i32, %c0_i32_0 : i32, i32
  }
  func.func @transform_5(%arg0: i32) -> (i32, i32) {
    %c0_i32 = arith.constant 0 : i32
    %c0_i32_0 = arith.constant 0 : i32
    %c0_i32_1 = arith.constant 0 : i32
    return %c0_i32, %c0_i32_0 : i32, i32
  }
  func.func @transform_6(%arg0: i32) -> (i32, i32) {
    %c0_i32 = arith.constant 0 : i32
    %c0_i32_0 = arith.constant 0 : i32
    %c0_i32_1 = arith.constant 0 : i32
    return %c0_i32, %c0_i32_0 : i32, i32
  }
  func.func @transform_7(%arg0: i32) -> (i32, i32) {
    %c0_i32 = arith.constant 0 : i32
    %c0_i32_0 = arith.constant 0 : i32
    return %c0_i32, %arg0 : i32, i32
  }
}

</mosaic_0001>

<bundles_post_ra>
// kernel: tpu_custom_call.1
= control target key start
LH: loop header
LB: loop body
LE: loop exit
PB: predicated region body
PF: predicated region fallthrough
CT: control target
= control target key end

     0   :  { %vm57_vm0 = vcmask 130048   ;;  %v632_v4 = vmov 0   ;;  %s775_s0 = inlined_call_operand.vmem [shape: f32[16,128], index: 0, kind: input, shape index: {}]   ;;  %s776_s1 = inlined_call_operand.vmem [shape: f32[32,16], index: 1, kind: input, shape index: {}]   ;;  %s777_s2 = inlined_call_operand.vmem [shape: f32[32,1], index: 2, kind: input, shape index: {}]   ;;  %s778_s3 = inlined_call_operand.vmem [shape: f32[32,32], index: 3, kind: input, shape index: {}]   ;;  %s779_s4 = inlined_call_operand.vmem [shape: f32[32,1], index: 4, kind: input, shape index: {}]   ;;  %s780_s5 = inlined_call_operand.vmem [shape: f32[8,32], index: 5, kind: input, shape index: {}]   ;;  %s781_s6 = inlined_call_operand.vmem [shape: f32[8,1], index: 6, kind: input, shape index: {}]   ;;  %s782_s7 = inlined_call_operand.hbm [shape: f32[8,128], index: 7, kind: output, shape index: {}]  }
   0x1   :  { %v31_v0 = vld [vmem:[%s775_s0] sm:$0xff]  ;;  %v32_v1 = vld [vmem:[%s775_s0 + $0x8] sm:$0xff]  ;;  %574 = vset.pattern.permute.xlu0 %v632_v4  ;;  %575 = vset.pattern.permute.xlu1 %v632_v4  ;;  %v35_v6 = vld [vmem:[%s777_s2 + $0x10] sm:$0xff] }
   0x2   :  { %v27_v2 = vld [vmem:[%s776_s1] sm:$0xff]  ;;  %v551_v3 = vpack.c.bf16 %v32_v1, %v31_v0  ;;  %v28_v7 = vld [vmem:[%s776_s1 + $0x8] sm:$0xff]  ;;  %49 = vperm.xlu1 %575, %v35_v6   ;;  %v29_v9 = vld [vmem:[%s776_s1 + $0x10] sm:$0xff] }
   0x3   :  { %520 = vmatprep.mubr.msk.f32.mxu0 %vm57_vm0, %v27_v2  ;;  %v33_v5 = vld [vmem:[%s777_s2] sm:$0xff]  ;;  %v34_v8 = vld [vmem:[%s777_s2 + $0x8] sm:$0xff]  ;;  %v36_v10 = vld [vmem:[%s777_s2 + $0x18] sm:$0xff] }
   0x4   :  { %552 = vmatprep.subr.bf16.mxu0 %v551_v3  ;;  %39 = vperm.xlu0 %574, %v33_v5  }
   0x5   :  { %554 = vmatpush3.bf16.msra.mxu0 %v551_v3 }
   0x6   :  { %12 = vsyncpa [#allocation3], 0  ;;  %v30_v11 = vld [vmem:[%s776_s1 + $0x18] sm:$0xff]  ;;  %v215_v12 = vld [vmem:[%s779_s4] sm:$0xff]  ;;  %54 = vperm.xlu1 %575, %v36_v10   ;;  %vm239_vm1 = vcmask 261120   ;;  %vm634_vm10 = vmmov 0  }
   0x7   :  { %v216_v13 = vld [vmem:[%s779_s4 + $0x8] sm:$0xff]  ;;  %v217_v14 = vld [vmem:[%s779_s4 + $0x10] sm:$0xff]  ;;  %v218_v15 = vld [vmem:[%s779_s4 + $0x18] sm:$0xff]  ;;  %s636_s11 = smov [#allocation2]  }
   0x8   :  { %521 = vmatmul.mubr.msk.f32.vlgmr.msra.gmra.mrb[0].mxu0 %vm57_vm0, %v28_v7  ;;  %44 = vperm.xlu0 %574, %v34_v8   ;;  %v394_v16 = vld [vmem:[%s781_s6] sm:$0xff]  ;;  %s480_s12 = sshll.u32 %s636_s11, 4  ;;  %s481_s12 = int_to_ptr.vmem [resolvable:$true] %s480_s12 }
   0x9   :  { %523 = vmatprep.mubr.msk.f32.mxu0 %vm57_vm0, %v29_v9  ;;  %v211_v17 = vld [vmem:[%s778_s3] sm:$0xff]  ;;  %s608_s13 = scalar_lea.vmem %s481_s12, 128  ;;  %p613_p1 = scmp.lt.s32.totalorder %s481_s12, %s481_s12 }
   0xa   :  { %226 = vperm.xlu1 %575, %v216_v13   ;;  %534 = vmatprep.mubr.msk.f32.mxu1 %vm239_vm1, %v211_v17  ;;  %v213_v17 = vld [vmem:[%s778_s3 + $0x10] sm:$0xff]  ;;  %p609_p0 = scmp.ne.s32.totalorder %s481_s12, %s608_s13  ;;  %p614_p2 = scmp.lt.s32.totalorder %s608_s13, %s608_s13 }
   0xc   :  { %524 = vmatmul.mubr.msk.f32.gmra.mrb[2].mxu0 %vm57_vm0, %v30_v11  ;;  %221 = vperm.xlu0 %574, %v215_v12   ;;  %p615_p3 = por %p614_p2, %p613_p1 }
   0xe   :  { %236 = vperm.xlu1 %575, %v218_v15   ;;  %p616_p4 = pnand %p615_p3, %p609_p0 }
  0x10   :  { %231 = vperm.xlu0 %574, %v217_v14  }
  0x14   :  { %397 = vperm.xlu0 %574, %v394_v16   ;;  %v212_v16 = vld [vmem:[%s778_s3 + $0x8] sm:$0xff] }
  0x81   :  { %v50_v19 = vpop.permute.xlu1 %49 }
  0x83   :  { %v40_v18 = vpop.permute.xlu0 %39 }
  0x85   :  { %v55_v26 = vpop.permute.xlu1 %54 }
  0x87   :  { %v45_v20 = vpop.permute.xlu0 %44 }
  0xdb   :  { %v522_v21 = vpop.f32.mrb[0].mxu0 }
  0xdc   :  { %v142_v22 = vadd.f32 %v522_v21, %v45_v20  ;;  %v136_v23 = vpop.f32.mrb[1].mxu0  ;;  %v635_v20 = vmov 0.0   ;;  %v227_v21 = vpop.permute.xlu1 %226 }
  0xdd   :  { %v137_v24 = vadd.f32 %v136_v23, %v40_v18  ;;  %v214_v18 = vld [vmem:[%s778_s3 + $0x18] sm:$0xff]  ;;  %548 = vmatprep.mubr.msk.f32.mxu0 %vm634_vm10, %v635_v20  ;;  %v393_v20 = vld [vmem:[%s780_s5] sm:$0xff] }
  0xde   :  { %v156_v25 = vmin.f32 %v142_v22, 20.0  ;;  %vm160_vm3 = vcmp.gt.f32.partialorder %v142_v22, 20.0 }
  0xdf   :  { %v155_v27 = vmin.f32 %v137_v24, 20.0  ;;  %v525_v28 = vpop.f32.mrb[2].mxu0  ;;  %vm159_vm5 = vcmp.gt.f32.partialorder %v137_v24, 20.0 }
  0xe0   :  { %v165_v29 = vmul.f32 1.442695, %v156_v25  ;;  %v730_v30 = vadd.f32 %v525_v28, %v55_v26  ;;  %v146_v31 = vpop.f32.mrb[3].mxu0  ;;  %v237_v28 = vpop.permute.xlu1 %236 }
  0xe1   :  { %v163_v32 = vmul.f32 1.442695, %v155_v27  ;;  %v732_v33 = vadd.f32 %v146_v31, %v50_v19  ;;  %v633_v19 = vmov 0.0|0.0  }
  0xe2   :  { %576 = vpow2.f32 %v165_v29  ;;  %v158_v34 = vmin.f32 %v730_v30, 20.0  ;;  %vm162_vm7 = vcmp.gt.f32.partialorder %v730_v30, 20.0  ;;  %563 = vmatprep.subr.bf16.mxu0 %v633_v19 }
  0xe3   :  { %578 = vpow2.f32 %v163_v32  ;;  %v157_v35 = vmin.f32 %v732_v33, 20.0  ;;  %vm161_vm9 = vcmp.gt.f32.partialorder %v732_v33, 20.0 }
  0xe4   :  { %v169_v36 = vmul.f32 1.442695, %v158_v34 }
  0xe5   :  { %v167_v37 = vmul.f32 1.442695, %v157_v35 }
  0xe6   :  { %580 = vpow2.f32 %v169_v36 }
  0xe7   :  { %582 = vpow2.f32 %v167_v37 }
  0xec   :  { %v577_v38 = vpop.eup %576 }
  0xed   :  { %v579_v39 = vpop.eup %578  ;;  %v180_v40 = vadd.f32 1.0, %v577_v38  ;;  %v183_v45 = vmul.f32 -0.5, %v577_v38  ;;  %v186_v49 = vand.u32 2147483647, %v577_v38 }
  0xee   :  { %v171_v41 = vadd.f32 1.0, %v579_v39  ;;  %v174_v47 = vmul.f32 -0.5, %v579_v39  ;;  %v177_v53 = vand.u32 2147483647, %v579_v39 }
  0xef   :  { %584 = vlog2.f32 %v180_v40  ;;  %v184_v48 = vadd.f32 1.0, %v183_v45  ;;  %vm187_vm2 = vcmp.lt.f32.partialorder %v186_v49, 0.0004427343 }
  0xf0   :  { %v581_v42 = vpop.eup %580  ;;  %586 = vlog2.f32 %v171_v41  ;;  %v175_v51 = vadd.f32 1.0, %v174_v47  ;;  %vm178_vm4 = vcmp.lt.f32.partialorder %v177_v53, 0.0004427343 }
  0xf1   :  { %v583_v43 = vpop.eup %582  ;;  %v198_v44 = vadd.f32 1.0, %v581_v42  ;;  %v201_v50 = vmul.f32 -0.5, %v581_v42  ;;  %v185_v57 = vmul.f32 %v577_v38, %v184_v48  ;;  %v204_v62 = vand.u32 2147483647, %v581_v42 }
  0xf2   :  { %v189_v46 = vadd.f32 1.0, %v583_v43  ;;  %v192_v52 = vmul.f32 -0.5, %v583_v43  ;;  %v176_v60 = vmul.f32 %v579_v39, %v175_v51  ;;  %v195_v0 = vand.u32 2147483647, %v583_v43 }
  0xf3   :  { %588 = vlog2.f32 %v198_v44  ;;  %v202_v58 = vadd.f32 1.0, %v201_v50  ;;  %vm205_vm6 = vcmp.lt.f32.partialorder %v204_v62, 0.0004427343 }
  0xf4   :  { %590 = vlog2.f32 %v189_v46  ;;  %v193_v61 = vadd.f32 1.0, %v192_v52  ;;  %vm196_vm8 = vcmp.lt.f32.partialorder %v195_v0, 0.0004427343 }
  0xf5   :  { %v203_v7 = vmul.f32 %v581_v42, %v202_v58 }
  0xf6   :  { %v194_v10 = vmul.f32 %v583_v43, %v193_v61 }
  0xf9   :  { %v585_v54 = vpop.eup %584 }
  0xfa   :  { %v587_v55 = vpop.eup %586  ;;  %v182_v56 = vmul.f32 0.6931472, %v585_v54 }
  0xfb   :  { %v173_v59 = vmul.f32 0.6931472, %v587_v55 }
  0xfc   :  { %v188_v63 = vsel %vm187_vm2, %v185_v57, %v182_v56 }
  0xfd   :  { %v589_v1 = vpop.eup %588  ;;  %v179_v2 = vsel %vm178_vm4, %v176_v60, %v173_v59  ;;  %v208_v3 = vsel %vm160_vm3, %v142_v22, %v188_v63  ;;  %v222_v22 = vpop.permute.xlu0 %221 }
  0xfe   :  { %v591_v4 = vpop.eup %590  ;;  %v207_v5 = vsel %vm159_vm5, %v137_v24, %v179_v2  ;;  %v200_v6 = vmul.f32 0.6931472, %v589_v1 }
  0xff   :  { %v555_v8 = vpack.c.bf16 %v208_v3, %v207_v5  ;;  %v191_v9 = vmul.f32 0.6931472, %v591_v4 }
 0x100   :  { %v206_v11 = vsel %vm205_vm6, %v203_v7, %v200_v6 }
 0x101   :  { %556 = vmatprep.subr.bf16.mxu1 %v555_v8  ;;  %v197_v12 = vsel %vm196_vm8, %v194_v10, %v191_v9  ;;  %v210_v13 = vsel %vm162_vm7, %v730_v30, %v206_v11  ;;  %v232_v31 = vpop.permute.xlu0 %231 }
 0x102   :  { %558 = vmatpush3.bf16.msra.mxu1 %v555_v8  ;;  %v209_v14 = vsel %vm161_vm9, %v732_v33, %v197_v12 }
 0x103   :  { %v559_v15 = vpack.c.bf16 %v210_v13, %v209_v14 }
 0x105   :  { %560 = vmatprep.subr.bf16.mxu1 %v559_v15 }
 0x106   :  { %562 = vmatpush3.bf16.msra.mxu1 %v559_v15 }
 0x109   :  { %535 = vmatmul.mubr.msk.f32.vlgmr.msra.gmra.mrb[0].mxu1 %vm239_vm1, %v212_v16 }
 0x10a   :  { %537 = vmatprep.mubr.msk.f32.mxu1 %vm239_vm1, %v213_v17 }
 0x10d   :  { %538 = vmatmul.mubr.msk.f32.gmra.mrb[2].mxu1 %vm239_vm1, %v214_v18 }
 0x1dc   :  { %v536_v23 = vpop.f32.mrb[0].mxu1 }
 0x1dd   :  { %v324_v24 = vadd.f32 %v536_v23, %v227_v21  ;;  %v318_v25 = vpop.f32.mrb[1].mxu1  ;;  %v398_v21 = vpop.permute.xlu0 %397 }
 0x1de   :  { %v319_v26 = vadd.f32 %v318_v25, %v222_v22 }
 0x1df   :  { %v338_v27 = vmin.f32 %v324_v24, 20.0  ;;  %vm342_vm12 = vcmp.gt.f32.partialorder %v324_v24, 20.0 }
 0x1e0   :  { %v337_v29 = vmin.f32 %v319_v26, 20.0  ;;  %v539_v30 = vpop.f32.mrb[2].mxu1  ;;  %vm341_vm14 = vcmp.gt.f32.partialorder %v319_v26, 20.0 }
 0x1e1   :  { %v347_v32 = vmul.f32 1.442695, %v338_v27  ;;  %v334_v33 = vadd.f32 %v539_v30, %v237_v28  ;;  %v328_v34 = vpop.f32.mrb[3].mxu1 }
 0x1e2   :  { %v345_v35 = vmul.f32 1.442695, %v337_v29  ;;  %v753_v36 = vadd.f32 %v328_v34, %v232_v31 }
 0x1e3   :  { %592 = vpow2.f32 %v347_v32  ;;  %v340_v37 = vmin.f32 %v334_v33, 20.0  ;;  %vm344_vm0 = vcmp.gt.f32.partialorder %v334_v33, 20.0 }
 0x1e4   :  { %594 = vpow2.f32 %v345_v35  ;;  %v339_v38 = vmin.f32 %v753_v36, 20.0  ;;  %vm343_vm3 = vcmp.gt.f32.partialorder %v753_v36, 20.0 }
 0x1e5   :  { %v351_v39 = vmul.f32 1.442695, %v340_v37 }
 0x1e6   :  { %v349_v40 = vmul.f32 1.442695, %v339_v38 }
 0x1e7   :  { %596 = vpow2.f32 %v351_v39 }
 0x1e8   :  { %598 = vpow2.f32 %v349_v40 }
 0x1ed   :  { %v593_v41 = vpop.eup %592 }
 0x1ee   :  { %v595_v42 = vpop.eup %594  ;;  %v362_v43 = vadd.f32 1.0, %v593_v41  ;;  %v365_v48 = vmul.f32 -0.5, %v593_v41  ;;  %v368_v52 = vand.u32 2147483647, %v593_v41 }
 0x1ef   :  { %v353_v44 = vadd.f32 1.0, %v595_v42  ;;  %v356_v50 = vmul.f32 -0.5, %v595_v42  ;;  %v359_v56 = vand.u32 2147483647, %v595_v42 }
 0x1f0   :  { %600 = vlog2.f32 %v362_v43  ;;  %v366_v51 = vadd.f32 1.0, %v365_v48  ;;  %vm369_vm11 = vcmp.lt.f32.partialorder %v368_v52, 0.0004427343 }
 0x1f1   :  { %v597_v45 = vpop.eup %596  ;;  %602 = vlog2.f32 %v353_v44  ;;  %v357_v54 = vadd.f32 1.0, %v356_v50  ;;  %vm360_vm13 = vcmp.lt.f32.partialorder %v359_v56, 0.0004427343 }
 0x1f2   :  { %v599_v46 = vpop.eup %598  ;;  %v380_v47 = vadd.f32 1.0, %v597_v45  ;;  %v383_v53 = vmul.f32 -0.5, %v597_v45  ;;  %v367_v60 = vmul.f32 %v593_v41, %v366_v51  ;;  %v386_v0 = vand.u32 2147483647, %v597_v45 }
 0x1f3   :  { %v371_v49 = vadd.f32 1.0, %v599_v46  ;;  %v374_v55 = vmul.f32 -0.5, %v599_v46  ;;  %v358_v63 = vmul.f32 %v595_v42, %v357_v54  ;;  %v377_v3 = vand.u32 2147483647, %v599_v46 }
 0x1f4   :  { %604 = vlog2.f32 %v380_v47  ;;  %v384_v61 = vadd.f32 1.0, %v383_v53  ;;  %vm387_vm15 = vcmp.lt.f32.partialorder %v386_v0, 0.0004427343 }
 0x1f5   :  { %606 = vlog2.f32 %v371_v49  ;;  %v375_v1 = vadd.f32 1.0, %v374_v55  ;;  %vm378_vm2 = vcmp.lt.f32.partialorder %v377_v3, 0.0004427343 }
 0x1f6   :  { %v385_v10 = vmul.f32 %v597_v45, %v384_v61 }
 0x1f7   :  { %v376_v13 = vmul.f32 %v599_v46, %v375_v1 }
 0x1fa   :  { %v601_v57 = vpop.eup %600 }
 0x1fb   :  { %v603_v58 = vpop.eup %602  ;;  %v364_v59 = vmul.f32 0.6931472, %v601_v57 }
 0x1fc   :  { %v355_v62 = vmul.f32 0.6931472, %v603_v58 }
 0x1fd   :  { %v370_v2 = vsel %vm369_vm11, %v367_v60, %v364_v59 }
 0x1fe   :  { %v605_v4 = vpop.eup %604  ;;  %v390_v5 = vsel %vm342_vm12, %v324_v24, %v370_v2  ;;  %v361_v6 = vsel %vm360_vm13, %v358_v63, %v355_v62 }
 0x1ff   :  { %v607_v7 = vpop.eup %606  ;;  %v389_v8 = vsel %vm341_vm14, %v319_v26, %v361_v6  ;;  %v382_v9 = vmul.f32 0.6931472, %v605_v4 }
 0x200   :  { %v564_v11 = vpack.c.bf16 %v390_v5, %v389_v8  ;;  %v373_v12 = vmul.f32 0.6931472, %v607_v7 }
 0x201   :  { %v388_v14 = vsel %vm387_vm15, %v385_v10, %v382_v9 }
 0x202   :  { %v392_v15 = vsel %vm344_vm0, %v334_v33, %v388_v14  ;;  %v379_v16 = vsel %vm378_vm2, %v376_v13, %v373_v12  ;;  %565 = vmatpush3.bf16.msra.mxu0 %v564_v11 }
 0x203   :  { %v391_v17 = vsel %vm343_vm3, %v753_v36, %v379_v16  ;;  %566 = vmatprep.subr.bf16.mxu0 %v633_v19 }
 0x204   :  { %v567_v18 = vpack.c.bf16 %v392_v15, %v391_v17 }
 0x206   :  { %568 = vmatpush3.bf16.msra.mxu0 %v567_v18 }
 0x209   :  { %549 = vmatmul.mubr.msk.f32.vlgmr.msra.gmra.mrb[4].mxu0 %vm239_vm1, %v393_v20 }
 0x2dc   :  { %v469_v22 = vpop.f32.mrb[4].mxu0 }
 0x2dd   :  { %v470_v23 = vadd.f32 %v469_v22, %v398_v21  ;;  %v550_v24 = vpop.f32.mrb[5].mxu0 }
 0x2df   :  { %473 = vst [vmem:[#allocation2] sm:$0xff] %v470_v23 }
 0x2e0   :  { %619 = shalt.err (!%p616_p4)
}
 0x2e1   :  { %s620_s5 = scalar_lea.hbm %s782_s7, 128 }
 0x2e2   :  { %p621_p5 = scmp.ne.s32.totalorder %s782_s7, %s620_s5  ;;  %p624_p6 = scmp.lt.u32.totalorder %s620_s5, %s782_s7 }
 0x2e4   :  { %p626_p7 = pnand %p624_p6, %p621_p5 }
 0x2e6   :  { %629 = shalt.err (!%p626_p7)
}
 0x2e7   :  { %483 = dma.vmem_to_hbm [thread:$0]  %s481_s12, 128, %s782_s7, [#allocation3]  }
 0x2e8   :  { %630 = dma.done.wait [#allocation3], 128  }
 0x2e9   :  { %631 = vsyncadd [#allocation3], 4294967168 }
 0x2ea   :  { %487 = vsyncpa [#allocation3], 1 }

</bundles_post_ra>
